<compile_context>
chip_gen: v7x
topology: tpu7x:2x2x1
jax: 0.10.0
libtpu: 0.0.40
codegen_flags: <defaults>
</compile_context>

<pallas_src>
import jax
import jax.numpy as jnp
from jax import lax
from jax.experimental import pallas as pl
from jax.experimental.pallas import tpu as pltpu


def _glm_fusion_kernel(xl_ref, xg_ref, wdw_ref, bigw_ref, bias_ref, o_ref, pad_scr):
    # xl_ref  : (1, H, W*C)        bf16  xl, NHWC with W and C flattened into the lane dim
    # xg_ref  : (1, H, W*C)        bf16  xg, same layout
    # wdw_ref : (9, W*C)           f32   depthwise 3x3 weights (BN scale folded), tiled over W
    # bigw_ref: (W*C, W*C)         bf16  block-diag( group-sum o pointwise-1x1 ) weight
    # bias_ref: (1, W*C)           f32   BN shift folded through the 1x1 conv, tiled over W
    # o_ref   : (1, H, W*C)        f32   fused output, lane-dense
    # pad_scr : (H+2, (W+2)*C)     f32   VMEM scratch holding the 1-px zero-padded xl
    _, H, WC = xl_ref.shape
    C = (pad_scr.shape[1] - WC) // 2          # pad_scr lane width = (W + 2) * C = WC + 2*C

    # 1-pixel zero halo built in VMEM (no wrapper-side jnp.pad HBM round trip).
    pad_scr[...] = jnp.zeros_like(pad_scr)
    pad_scr[1:H + 1, C:C + WC] = xl_ref[0].astype(pad_scr.dtype)

    # Depthwise 3x3 (+ folded BN scale): 9 shifted lane-dense VPU multiply-adds, f32 accumulation.
    t = jnp.zeros((H, WC), jnp.float32)
    for kh in range(3):
        for kw in range(3):
            tap = kh * 3 + kw
            win = pad_scr[kh:kh + H, kw * C:kw * C + WC]     # == xpad[h+kh, w+kw, c], lane-dense
            t = t + win * wdw_ref[tap:tap + 1, :]

    # Group-sum over channel groups + pointwise 1x1 + folded BN shift:
    # a single lane-space MXU matmul against the host-built block-diagonal weight.
    z = jnp.dot(t.astype(jnp.bfloat16), bigw_ref[...],
                preferred_element_type=jnp.float32) + bias_ref[...]
    xls = jnp.maximum(z, 0.0)                                # ReLU

    # out = x1*sig - x1*(1-sig) = x1 * (2*sigmoid(xls) - 1) = x1 * tanh(xls / 2)   (one EUP op)
    x1 = xl_ref[0].astype(jnp.float32) + xg_ref[0].astype(jnp.float32)
    o_ref[0] = (x1 * jnp.tanh(0.5 * xls)).astype(o_ref.dtype)


def glmarsking_fusion_pallas_nhwc(xl_flat, xg_flat, conv_w, pw_w, gamma, beta,
                                  run_mean, run_var, eps=1e-5, *, channels):
    """xl_flat/xg_flat: (N, H, W*C) lane-dense NHWC activations.  Returns (N, H, W*C) f32."""
    C = channels
    N, H, WC = xl_flat.shape
    W = WC // C
    plane, g = conv_w.shape[0], conv_w.shape[1]
    assert plane * g == C and conv_w.shape[2:] == (3, 3)
    assert pw_w.shape[:2] == (C, plane)

    # ---- host-side, one-time weight prep (eval-mode BatchNorm fold) ----
    scale = gamma / jnp.sqrt(run_var + eps)                          # (plane,)
    shift = beta - run_mean * scale                                  # (plane,)
    # depthwise view of the grouped conv: input channel c uses conv_w[c // g, c % g]
    wch = (conv_w * scale[:, None, None, None]).reshape(C, 3, 3)     # BN scale folded
    wdw = jnp.tile(jnp.transpose(wch, (1, 2, 0)).reshape(9, C), (1, W)).astype(jnp.float32)
    # group-sum fused into the pointwise 1x1:  out[c_out] = sum_c pw[c_out, c // g] * t[c]
    pw = pw_w[:, :, 0, 0].astype(jnp.float32)                        # (C, plane)
    w1e = jnp.transpose(pw)[jnp.arange(C) // g]                      # (C, C)
    bigw = jnp.kron(jnp.eye(W, dtype=jnp.float32), w1e).astype(jnp.bfloat16)   # (W*C, W*C)
    bias_row = jnp.tile(pw @ shift, (W,)).reshape(1, WC).astype(jnp.float32)

    # TODO(synk): emit bf16 output if the downstream consumer tolerates it (halves write traffic).
    return pl.pallas_call(
        _glm_fusion_kernel,
        out_shape=jax.ShapeDtypeStruct((N, H, WC), jnp.float32),
        grid=(N,),
        in_specs=[
            pl.BlockSpec((1, H, WC), lambda b: (b, 0, 0)),
            pl.BlockSpec((1, H, WC), lambda b: (b, 0, 0)),
            pl.BlockSpec((9, WC), lambda b: (0, 0)),
            pl.BlockSpec((WC, WC), lambda b: (0, 0)),
            pl.BlockSpec((1, WC), lambda b: (0, 0)),
        ],
        out_specs=pl.BlockSpec((1, H, WC), lambda b: (b, 0, 0)),
        scratch_shapes=[pltpu.VMEM((H + 2, (W + 2) * C), jnp.float32)],
        compiler_params=pltpu.CompilerParams(dimension_semantics=("parallel",)),
    )(xl_flat.astype(jnp.bfloat16), xg_flat.astype(jnp.bfloat16), wdw, bigw, bias_row)


def glmarsking_fusion_pallas(xl, xg, conv_w, pw_w, gamma, beta, run_mean, run_var, eps=1e-5):
    """NCHW adapter matching the PyTorch module interface.  xl, xg: (N, C, H, W) f32."""
    N, C, H, W = xl.shape
    # TODO(synk): drop these NCHW <-> lane-dense transposes when the producer/consumer can use the
    # (N, H, W*C) layout directly — each one is a full HBM round trip.
    to_flat = lambda a: jnp.transpose(a, (0, 2, 3, 1)).reshape(N, H, W * C).astype(jnp.bfloat16)
    out = glmarsking_fusion_pallas_nhwc(to_flat(xl), to_flat(xg), conv_w, pw_w,
                                        gamma, beta, run_mean, run_var, eps, channels=C)
    return jnp.transpose(out.reshape(N, H, W, C), (0, 3, 1, 2))


def glmarsking_fusion_reference(xl, xg, conv_w, pw_w, gamma, beta, run_mean, run_var,
                                eps=1e-5):
    """Pure-JAX f32 reference matching the PyTorch forward (eval-mode BN)."""
    plane = conv_w.shape[0]
    dn = ("NCHW", "OIHW", "NCHW")
    x1 = xl + xg
    y = lax.conv_general_dilated(xl, conv_w, (1, 1), ((1, 1), (1, 1)),
                                 dimension_numbers=dn, feature_group_count=plane)
    inv = gamma / jnp.sqrt(run_var + eps)
    y = y * inv.reshape(1, -1, 1, 1) + (beta - run_mean * inv).reshape(1, -1, 1, 1)
    y = lax.conv_general_dilated(y, pw_w, (1, 1), ((0, 0), (0, 0)),
                                 dimension_numbers=dn)
    y = jnp.maximum(y, 0.0)                   # ReLU is applied AFTER the pointwise conv
    wgt = jax.nn.sigmoid(y)
    return x1 * wgt - x1 * (1.0 - wgt)


if __name__ == "__main__":
    # GLMarskingFusion(channel=16, r=4): interchannel = 4 -> Context_Flow plane = 4, groups of 4.
    N, C, H, W = 2, 16, 16, 16
    r = 4
    interchannel = C // r                 # r passed down to Context_Flow
    plane = C // interchannel             # conv1 out-channels / groups
    g = C // plane                        # input channels per group

    key = jax.random.PRNGKey(0)
    k = jax.random.split(key, 8)
    xl = jax.random.normal(k[0], (N, C, H, W), jnp.float32)
    xg = jax.random.normal(k[1], (N, C, H, W), jnp.float32)
    conv_w = jax.random.normal(k[2], (plane, g, 3, 3), jnp.float32) * 0.1
    pw_w = jax.random.normal(k[3], (C, plane, 1, 1), jnp.float32) * 0.1
    gamma = jax.random.uniform(k[4], (plane,), jnp.float32, minval=0.5, maxval=1.5)
    beta = jax.random.normal(k[5], (plane,), jnp.float32) * 0.1
    run_mean = jax.random.normal(k[6], (plane,), jnp.float32) * 0.1
    run_var = jax.random.uniform(k[7], (plane,), jnp.float32, minval=0.5, maxval=1.5)

    out = jax.jit(glmarsking_fusion_pallas)(
        xl, xg, conv_w, pw_w, gamma, beta, run_mean, run_var)
    out = jax.block_until_ready(out)

    ref = glmarsking_fusion_reference(xl, xg, conv_w, pw_w, gamma, beta, run_mean, run_var)
    ref = jax.block_until_ready(ref)

    assert out.shape == (N, C, H, W)
    max_err = float(jnp.max(jnp.abs(out - ref)))
    # bf16 activation streaming + bf16 MXU weights vs f32 reference -> agree to ~1e-3..1e-2.
    assert jnp.allclose(out, ref, atol=2e-2, rtol=2e-2), f"mismatch vs reference ({max_err=})"
    print("KERNEL_OK")
</pallas_src>

<mosaic_0001>
module attributes {stable_mosaic.version = 11 : i64} {
  func.func @_glm_fusion_kernel(%arg0: i32, %arg1: memref<1x16x256xbf16, #tpu.memory_space<vmem>>, %arg2: memref<1x16x256xbf16, #tpu.memory_space<vmem>>, %arg3: memref<9x256xf32, #tpu.memory_space<vmem>>, %arg4: memref<256x256xbf16, #tpu.memory_space<vmem>>, %arg5: memref<1x256xf32, #tpu.memory_space<vmem>>, %arg6: memref<1x16x256xf32, #tpu.memory_space<vmem>>, %arg7: memref<18x288xf32, #tpu.memory_space<vmem>>) attributes {dimension_semantics = [#tpu.dimension_semantics<parallel>], iteration_bounds = array<i64: 2>, scalar_prefetch = 0 : i64, scratch_operands = 1 : i64, tpu.core_type = #tpu.core_type<tc>, window_params = [{transform_indices = @transform_0, window_bounds = array<i64: 1, 16, 256>}, {transform_indices = @transform_1, window_bounds = array<i64: 1, 16, 256>}, {pipeline_mode = #tpu.pipeline_mode<synchronous>, transform_indices = @transform_2, window_bounds = array<i64: 9, 256>}, {pipeline_mode = #tpu.pipeline_mode<synchronous>, transform_indices = @transform_3, window_bounds = array<i64: 256, 256>}, {pipeline_mode = #tpu.pipeline_mode<synchronous>, transform_indices = @transform_4, window_bounds = array<i64: 1, 256>}, {transform_indices = @transform_5, window_bounds = array<i64: 1, 16, 256>}]} {
    %cst = arith.constant 0.000000e+00 : f32
    %0 = vector.broadcast %cst : f32 to vector<18x288xf32>
    %c0 = arith.constant 0 : index
    %c0_0 = arith.constant 0 : index
    %1 = vector.load %arg7[%c0, %c0_0] : memref<18x288xf32, #tpu.memory_space<vmem>>, vector<18x288xf32>
    tpu.vector_store %arg7[%c0, %c0_0], %0 {strides = array<i32>} : memref<18x288xf32, #tpu.memory_space<vmem>>, vector<18x288xf32>,
    %c0_1 = arith.constant 0 : index
    %c0_2 = arith.constant 0 : index
    %c0_3 = arith.constant 0 : index
    %2 = vector.load %arg1[%c0_1, %c0_2, %c0_3] : memref<1x16x256xbf16, #tpu.memory_space<vmem>>, vector<1x16x256xbf16>
    %3 = vector.shape_cast %2 : vector<1x16x256xbf16> to vector<16x256xbf16>
    %4 = arith.extf %3 : vector<16x256xbf16> to vector<16x256xf32>
    %c1 = arith.constant 1 : index
    %c16 = arith.constant 16 : index
    %5 = vector.load %arg7[%c1, %c16] : memref<18x288xf32, #tpu.memory_space<vmem>>, vector<16x256xf32>
    tpu.vector_store %arg7[%c1, %c16], %4 {strides = array<i32>} : memref<18x288xf32, #tpu.memory_space<vmem>>, vector<16x256xf32>,
    %cst_4 = arith.constant 0.000000e+00 : f32
    %6 = vector.broadcast %cst_4 : f32 to vector<16x256xf32>
    %c0_5 = arith.constant 0 : index
    %c0_6 = arith.constant 0 : index
    %7 = vector.load %arg7[%c0_5, %c0_6] : memref<18x288xf32, #tpu.memory_space<vmem>>, vector<16x256xf32>
    %c0_7 = arith.constant 0 : index
    %c0_8 = arith.constant 0 : index
    %8 = vector.load %arg3[%c0_7, %c0_8] : memref<9x256xf32, #tpu.memory_space<vmem>>, vector<1x256xf32>
    %9 = vector.broadcast %8 : vector<1x256xf32> to vector<16x256xf32>
    %10 = arith.mulf %7, %9 : vector<16x256xf32>
    %11 = arith.addf %6, %10 : vector<16x256xf32>
    %c0_9 = arith.constant 0 : index
    %c16_10 = arith.constant 16 : index
    %12 = vector.load %arg7[%c0_9, %c16_10] : memref<18x288xf32, #tpu.memory_space<vmem>>, vector<16x256xf32>
    %c1_11 = arith.constant 1 : index
    %c0_12 = arith.constant 0 : index
    %13 = vector.load %arg3[%c1_11, %c0_12] : memref<9x256xf32, #tpu.memory_space<vmem>>, vector<1x256xf32>
    %14 = vector.broadcast %13 : vector<1x256xf32> to vector<16x256xf32>
    %15 = arith.mulf %12, %14 : vector<16x256xf32>
    %16 = arith.addf %11, %15 : vector<16x256xf32>
    %c0_13 = arith.constant 0 : index
    %c32 = arith.constant 32 : index
    %17 = vector.load %arg7[%c0_13, %c32] : memref<18x288xf32, #tpu.memory_space<vmem>>, vector<16x256xf32>
    %c2 = arith.constant 2 : index
    %c0_14 = arith.constant 0 : index
    %18 = vector.load %arg3[%c2, %c0_14] : memref<9x256xf32, #tpu.memory_space<vmem>>, vector<1x256xf32>
    %19 = vector.broadcast %18 : vector<1x256xf32> to vector<16x256xf32>
    %20 = arith.mulf %17, %19 : vector<16x256xf32>
    %21 = arith.addf %16, %20 : vector<16x256xf32>
    %c1_15 = arith.constant 1 : index
    %c0_16 = arith.constant 0 : index
    %22 = vector.load %arg7[%c1_15, %c0_16] : memref<18x288xf32, #tpu.memory_space<vmem>>, vector<16x256xf32>
    %c3 = arith.constant 3 : index
    %c0_17 = arith.constant 0 : index
    %23 = vector.load %arg3[%c3, %c0_17] : memref<9x256xf32, #tpu.memory_space<vmem>>, vector<1x256xf32>
    %24 = vector.broadcast %23 : vector<1x256xf32> to vector<16x256xf32>
    %25 = arith.mulf %22, %24 : vector<16x256xf32>
    %26 = arith.addf %21, %25 : vector<16x256xf32>
    %c1_18 = arith.constant 1 : index
    %c16_19 = arith.constant 16 : index
    %27 = vector.load %arg7[%c1_18, %c16_19] : memref<18x288xf32, #tpu.memory_space<vmem>>, vector<16x256xf32>
    %c4 = arith.constant 4 : index
    %c0_20 = arith.constant 0 : index
    %28 = vector.load %arg3[%c4, %c0_20] : memref<9x256xf32, #tpu.memory_space<vmem>>, vector<1x256xf32>
    %29 = vector.broadcast %28 : vector<1x256xf32> to vector<16x256xf32>
    %30 = arith.mulf %27, %29 : vector<16x256xf32>
    %31 = arith.addf %26, %30 : vector<16x256xf32>
    %c1_21 = arith.constant 1 : index
    %c32_22 = arith.constant 32 : index
    %32 = vector.load %arg7[%c1_21, %c32_22] : memref<18x288xf32, #tpu.memory_space<vmem>>, vector<16x256xf32>
    %c5 = arith.constant 5 : index
    %c0_23 = arith.constant 0 : index
    %33 = vector.load %arg3[%c5, %c0_23] : memref<9x256xf32, #tpu.memory_space<vmem>>, vector<1x256xf32>
    %34 = vector.broadcast %33 : vector<1x256xf32> to vector<16x256xf32>
    %35 = arith.mulf %32, %34 : vector<16x256xf32>
    %36 = arith.addf %31, %35 : vector<16x256xf32>
    %c2_24 = arith.constant 2 : index
    %c0_25 = arith.constant 0 : index
    %37 = vector.load %arg7[%c2_24, %c0_25] : memref<18x288xf32, #tpu.memory_space<vmem>>, vector<16x256xf32>
    %c6 = arith.constant 6 : index
    %c0_26 = arith.constant 0 : index
    %38 = vector.load %arg3[%c6, %c0_26] : memref<9x256xf32, #tpu.memory_space<vmem>>, vector<1x256xf32>
    %39 = vector.broadcast %38 : vector<1x256xf32> to vector<16x256xf32>
    %40 = arith.mulf %37, %39 : vector<16x256xf32>
    %41 = arith.addf %36, %40 : vector<16x256xf32>
    %c2_27 = arith.constant 2 : index
    %c16_28 = arith.constant 16 : index
    %42 = vector.load %arg7[%c2_27, %c16_28] : memref<18x288xf32, #tpu.memory_space<vmem>>, vector<16x256xf32>
    %c7 = arith.constant 7 : index
    %c0_29 = arith.constant 0 : index
    %43 = vector.load %arg3[%c7, %c0_29] : memref<9x256xf32, #tpu.memory_space<vmem>>, vector<1x256xf32>
    %44 = vector.broadcast %43 : vector<1x256xf32> to vector<16x256xf32>
    %45 = arith.mulf %42, %44 : vector<16x256xf32>
    %46 = arith.addf %41, %45 : vector<16x256xf32>
    %c2_30 = arith.constant 2 : index
    %c32_31 = arith.constant 32 : index
    %47 = vector.load %arg7[%c2_30, %c32_31] : memref<18x288xf32, #tpu.memory_space<vmem>>, vector<16x256xf32>
    %c8 = arith.constant 8 : index
    %c0_32 = arith.constant 0 : index
    %48 = vector.load %arg3[%c8, %c0_32] : memref<9x256xf32, #tpu.memory_space<vmem>>, vector<1x256xf32>
    %49 = vector.broadcast %48 : vector<1x256xf32> to vector<16x256xf32>
    %50 = arith.mulf %47, %49 : vector<16x256xf32>
    %51 = arith.addf %46, %50 : vector<16x256xf32>
    %52 = arith.truncf %51 : vector<16x256xf32> to vector<16x256xbf16>
    %c0_33 = arith.constant 0 : index
    %c0_34 = arith.constant 0 : index
    %53 = vector.load %arg4[%c0_33, %c0_34] : memref<256x256xbf16, #tpu.memory_space<vmem>>, vector<256x256xbf16>
    %cst_35 = arith.constant dense<0.000000e+00> : vector<16x256xf32>
    %54 = tpu.matmul %52, %53, %cst_35 {dimension_numbers = #tpu.dot_dimension_numbers<[1], [0], [0], [1], [0, 0, 1, 1], [], []>} : vector<16x256xbf16>, vector<256x256xbf16>, vector<16x256xf32> -> vector<16x256xf32>
    %c0_36 = arith.constant 0 : index
    %c0_37 = arith.constant 0 : index
    %55 = vector.load %arg5[%c0_36, %c0_37] : memref<1x256xf32, #tpu.memory_space<vmem>>, vector<1x256xf32>
    %56 = vector.broadcast %55 : vector<1x256xf32> to vector<16x256xf32>
    %57 = arith.addf %54, %56 : vector<16x256xf32>
    %cst_38 = arith.constant 0.000000e+00 : f32
    %58 = vector.broadcast %cst_38 : f32 to vector<16x256xf32>
    %59 = arith.maximumf %57, %58 : vector<16x256xf32>
    %c0_39 = arith.constant 0 : index
    %c0_40 = arith.constant 0 : index
    %c0_41 = arith.constant 0 : index
    %60 = vector.load %arg1[%c0_39, %c0_40, %c0_41] : memref<1x16x256xbf16, #tpu.memory_space<vmem>>, vector<1x16x256xbf16>
    %61 = vector.shape_cast %60 : vector<1x16x256xbf16> to vector<16x256xbf16>
    %62 = arith.extf %61 : vector<16x256xbf16> to vector<16x256xf32>
    %c0_42 = arith.constant 0 : index
    %c0_43 = arith.constant 0 : index
    %c0_44 = arith.constant 0 : index
    %63 = vector.load %arg2[%c0_42, %c0_43, %c0_44] : memref<1x16x256xbf16, #tpu.memory_space<vmem>>, vector<1x16x256xbf16>
    %64 = vector.shape_cast %63 : vector<1x16x256xbf16> to vector<16x256xbf16>
    %65 = arith.extf %64 : vector<16x256xbf16> to vector<16x256xf32>
    %66 = arith.addf %62, %65 : vector<16x256xf32>
    %cst_45 = arith.constant 5.000000e-01 : f32
    %67 = vector.broadcast %cst_45 : f32 to vector<16x256xf32>
    %68 = arith.mulf %67, %59 : vector<16x256xf32>
    %69 = math.tanh %68 : vector<16x256xf32>
    %70 = arith.mulf %66, %69 : vector<16x256xf32>
    %c0_46 = arith.constant 0 : index
    %c0_47 = arith.constant 0 : index
    %c0_48 = arith.constant 0 : index
    %71 = vector.load %arg6[%c0_46, %c0_47, %c0_48] : memref<1x16x256xf32, #tpu.memory_space<vmem>>, vector<1x16x256xf32>
    %72 = vector.shape_cast %71 : vector<1x16x256xf32> to vector<16x256xf32>
    %73 = vector.shape_cast %70 : vector<16x256xf32> to vector<1x16x256xf32>
    tpu.vector_store %arg6[%c0_46, %c0_47, %c0_48], %73 {strides = array<i32>} : memref<1x16x256xf32, #tpu.memory_space<vmem>>, vector<1x16x256xf32>,
    return
  }
  func.func @transform_0(%arg0: i32) -> (i32, i32, i32) {
    %c0_i32 = arith.constant 0 : i32
    %c0_i32_0 = arith.constant 0 : i32
    %c0_i32_1 = arith.constant 0 : i32
    return %arg0, %c0_i32, %c0_i32_0 : i32, i32, i32
  }
  func.func @transform_1(%arg0: i32) -> (i32, i32, i32) {
    %c0_i32 = arith.constant 0 : i32
    %c0_i32_0 = arith.constant 0 : i32
    %c0_i32_1 = arith.constant 0 : i32
    return %arg0, %c0_i32, %c0_i32_0 : i32, i32, i32
  }
  func.func @transform_2(%arg0: i32) -> (i32, i32) {
    %c0_i32 = arith.constant 0 : i32
    %c0_i32_0 = arith.constant 0 : i32
    %c0_i32_1 = arith.constant 0 : i32
    return %c0_i32, %c0_i32_0 : i32, i32
  }
  func.func @transform_3(%arg0: i32) -> (i32, i32) {
    %c0_i32 = arith.constant 0 : i32
    %c0_i32_0 = arith.constant 0 : i32
    %c0_i32_1 = arith.constant 0 : i32
    return %c0_i32, %c0_i32_0 : i32, i32
  }
  func.func @transform_4(%arg0: i32) -> (i32, i32) {
    %c0_i32 = arith.constant 0 : i32
    %c0_i32_0 = arith.constant 0 : i32
    %c0_i32_1 = arith.constant 0 : i32
    return %c0_i32, %c0_i32_0 : i32, i32
  }
  func.func @transform_5(%arg0: i32) -> (i32, i32, i32) {
    %c0_i32 = arith.constant 0 : i32
    %c0_i32_0 = arith.constant 0 : i32
    %c0_i32_1 = arith.constant 0 : i32
    return %arg0, %c0_i32, %c0_i32_0 : i32, i32, i32
  }
}

</mosaic_0001>

<bundles_post_ra>
// kernel: tile.16
= control target key start
LH: loop header
LB: loop body
LE: loop exit
PB: predicated region body
PF: predicated region fallthrough
CT: control target
= control target key end

     0   :  { %s28_s0 = inlined_call_operand.vmem [shape: f32[16], index: 0, kind: input, shape index: {}]   ;;  %s29_s1 = inlined_call_operand.vmem [shape: f32[16,16], index: 1, kind: output, shape index: {}]  }
   0x1   :  { %v4_v0 = vld [vmem:[%s28_s0] ss:$0 sm:$0xff] }
   0x2   :  { %5 = vst [vmem:[%s29_s1] sm:$0xff] %v4_v0  ;;  %8 = vst [vmem:[%s29_s1 + $0x8] sm:$0xff] %v4_v0 }

// kernel: tile.17
= control target key start
LH: loop header
LB: loop body
LE: loop exit
PB: predicated region body
PF: predicated region fallthrough
CT: control target
= control target key end

     0   :  { %s7_s6 = smov 3  ;;  %s21_s9 = smov 3  ;;  %vm4_vm0 = vcmask 130048   ;;  %vm11_vm1 = vcmask 1048448   ;;  %vm18_vm2 = vcmask 917248   ;;  %vm25_vm3 = vcmask 786048   ;;  %s128_s0 = inlined_call_operand.vmem [shape: f32[16,16], index: 0, kind: input, shape index: {}]   ;;  %s129_s1 = inlined_call_operand.vmem [shape: f32[1,256], index: 1, kind: output, shape index: {}]  }
   0x1   :  { %v66_v0 = vld [vmem:[%s128_s0 + $0x7] ss:$8 sm:%s7_s6]   ;;  %s81_s10 = smov 112   ;;  %v68_v1 = vld [vmem:[%s128_s0 + $0x5] ss:$8 sm:%s21_s9]   ;;  %s14_s13 = smov 3 }
   0x2   :  { %9 = vrot.lane.b32.xlu0 %v66_v0, %s81_s10  ;;  %s82_s14 = smov 80   ;;  %v67_v2 = vld [vmem:[%s128_s0 + $0x6] ss:$8 sm:%s14_s13]   ;;  %s28_s17 = smov 3  ;;  %vm32_vm4 = vcmask 654848   ;;  %vm39_vm5 = vcmask 523648  }
   0x3   :  { %23 = vrot.lane.b32.xlu1 %v68_v1, %s82_s14  ;;  %v69_v3 = vld [vmem:[%s128_s0 + $0x4] ss:$8 sm:%s28_s17]   ;;  %s35_s20 = smov 3  ;;  %s42_s21 = smov 3  ;;  %vm46_vm6 = vcmask 392448   ;;  %vm53_vm7 = vcmask 261248  }
   0x4   :  { %s83_s22 = smov 96   ;;  %s84_s23 = smov 64   ;;  %v70_v4 = vld [vmem:[%s128_s0 + $0x3] ss:$8 sm:%s35_s20]   ;;  %v71_v5 = vld [vmem:[%s128_s0 + $0x2] ss:$8 sm:%s42_s21]  }
   0x5   :  { %s2_s26 = smov 3  ;;  %s49_s29 = smov 3 }
   0x6   :  { %16 = vrot.lane.b32.xlu0 %v67_v2, %s83_s22  ;;  %v3_v6 = vld [vmem:[%s128_s0] ss:$8 sm:%s2_s26]   ;;  %s85_s3 = smov 48   ;;  %s86_s4 = smov 32  }
   0x7   :  { %30 = vrot.lane.b32.xlu1 %v69_v3, %s84_s23  ;;  %5 = vst.msk [vmem:[#allocation0] ss:$8 sm:$0x3] %vm4_vm0, %v3_v6   ;;  %v72_v7 = vld [vmem:[%s128_s0 + $0x1] ss:$8 sm:%s49_s29]   ;;  %s87_s0 = smov 16  }
   0xa   :  { %37 = vrot.lane.b32.xlu0 %v70_v4, %s85_s3 }
   0xb   :  { %44 = vrot.lane.b32.xlu1 %v71_v5, %s86_s4 }
   0xe   :  { %51 = vrot.lane.b32.xlu0 %v72_v7, %s87_s0 }
  0x74   :  { %v10_v8 = vpop.permute.xlu0 %9  }
  0x75   :  { %12 = vst.msk [vmem:[#allocation0] ss:$8 sm:$0x3] %vm11_vm1, %v10_v8   ;;  %v24_v9 = vpop.permute.xlu1 %23  }
  0x78   :  { %v17_v10 = vpop.permute.xlu0 %16  }
  0x79   :  { %19 = vst.msk [vmem:[#allocation0] ss:$8 sm:$0x3] %vm18_vm2, %v17_v10   ;;  %v31_v11 = vpop.permute.xlu1 %30  }
  0x7a   :  { %26 = vst.msk [vmem:[#allocation0] ss:$8 sm:$0x3] %vm25_vm3, %v24_v9  }
  0x7b   :  { %33 = vst.msk [vmem:[#allocation0] ss:$8 sm:$0x3] %vm32_vm4, %v31_v11  }
  0x7c   :  { %v38_v12 = vpop.permute.xlu0 %37  }
  0x7d   :  { %40 = vst.msk [vmem:[#allocation0] ss:$8 sm:$0x3] %vm39_vm5, %v38_v12   ;;  %v45_v13 = vpop.permute.xlu1 %44  }
  0x7e   :  { %47 = vst.msk [vmem:[#allocation0] ss:$8 sm:$0x3] %vm46_vm6, %v45_v13  }
  0x80   :  { %v52_v14 = vpop.permute.xlu0 %51  }
  0x81   :  { %54 = vst.msk [vmem:[#allocation0] ss:$8 sm:$0x3] %vm53_vm7, %v52_v14  }
  0x88   :  { %v58_v15 = vld [vmem:[#allocation0] sm:$0x1]  ;;  %v62_v16 = vld [vmem:[#allocation0 + $0x8] sm:$0x1] }
  0x89   :  { %60 = vst [vmem:[%s129_s1] sm:$0x1] %v58_v15  ;;  %73 = vst [vmem:[%s129_s1 + $0x1] sm:$0x1] %v62_v16 }

// kernel: tile.12
= control target key start
LH: loop header
LB: loop body
LE: loop exit
PB: predicated region body
PF: predicated region fallthrough
CT: control target
= control target key end

     0   :  { %s36_s6 = smov 3  ;;  %s39_s7 = smov 12  ;;  %vm41_vm0 = vcmask 1043458   ;;  %vm46_vm1 = vcmask 1045508   ;;  %vm51_vm2 = vcmask 1047558   ;;  %vm4_vm3 = vcmask 1047556   ;;  %s865_s0 = inlined_call_operand.vmem [shape: f32[9,16,16], index: 0, kind: input, shape index: {}]   ;;  %s866_s1 = inlined_call_operand.vmem [shape: f32[9,256], index: 1, kind: output, shape index: {}]  }
   0x1   :  { %v417_v0 = vld [vmem:[%s865_s0 + $0x7] ss:$16 sm:%s36_s6]   ;;  %s44_s12 = smov 48  ;;  %s49_s13 = smov 192  ;;  %vm6_vm4 = vcmask 130048   ;;  %vm55_vm5 = vcmask 1048448  }
   0x2   :  { %v418_v1 = vld [vmem:[%s865_s0 + $0x7] ss:$16 sm:%s39_s7]   ;;  %s81_s18 = smov 3  ;;  %s58_s21 = smov 3  ;;  %vm108_vm6 = vcmask 917248   ;;  %vm161_vm7 = vcmask 786048  }
   0x3   :  { %v42_v2 = vsel %vm41_vm0, %v418_v1, %v417_v0  ;;  %v419_v3 = vld [vmem:[%s865_s0 + $0x7] ss:$16 sm:%s44_s12]   ;;  %s61_s22 = smov 12  ;;  %s501_s23 = smov 112   ;;  %v421_v8 = vld [vmem:[%s865_s0 + $0xf] ss:$16 sm:%s58_s21]  }
   0x4   :  { %v420_v4 = vld [vmem:[%s865_s0 + $0x7] ss:$16 sm:%s49_s13]   ;;  %v47_v5 = vsel %vm46_vm1, %v419_v3, %v42_v2  ;;  %s66_s26 = smov 48  ;;  %s71_s27 = smov 192  ;;  %v422_v9 = vld [vmem:[%s865_s0 + $0xf] ss:$16 sm:%s61_s22]  }
   0x5   :  { %v426_v6 = vld [vmem:[%s865_s0 + $0x87] ss:$8 sm:%s81_s18]   ;;  %v52_v7 = vsel %vm51_vm2, %v420_v4, %v47_v5  ;;  %s89_s30 = smov 3  ;;  %s92_s2 = smov 12  ;;  %v64_v10 = vsel %vm41_vm0, %v422_v9, %v421_v8  ;;  %vm214_vm8 = vcmask 654848   ;;  %vm267_vm9 = vcmask 523648  }
   0x6   :  { %83 = vrot.lane.b32.xlu1 %v426_v6, %s501_s23  ;;  %53 = vrot.lane.b32.xlu0 %v52_v7, %s501_s23  ;;  %v423_v11 = vld [vmem:[%s865_s0 + $0xf] ss:$16 sm:%s66_s26]   ;;  %s97_s7 = smov 48  ;;  %s102_s8 = smov 192  ;;  %vm320_vm10 = vcmask 392448   ;;  %vm373_vm11 = vcmask 261248  }
   0x7   :  { %v424_v12 = vld [vmem:[%s865_s0 + $0xf] ss:$16 sm:%s71_s27]   ;;  %v69_v13 = vsel %vm46_vm1, %v423_v11, %v64_v10  ;;  %v428_v14 = vld [vmem:[%s865_s0 + $0x6] ss:$16 sm:%s89_s30]   ;;  %s111_s13 = smov 3  ;;  %s114_s18 = smov 12 }
   0x8   :  { %v429_v15 = vld [vmem:[%s865_s0 + $0x6] ss:$16 sm:%s92_s2]   ;;  %v74_v16 = vsel %vm51_vm2, %v424_v12, %v69_v13  ;;  %s119_s19 = smov 48  ;;  %v432_v21 = vld [vmem:[%s865_s0 + $0xe] ss:$16 sm:%s111_s13]   ;;  %s124_s22 = smov 192 }
   0x9   :  { %v95_v17 = vsel %vm41_vm0, %v429_v15, %v428_v14  ;;  %v430_v18 = vld [vmem:[%s865_s0 + $0x6] ss:$16 sm:%s97_s7]   ;;  %v433_v23 = vld [vmem:[%s865_s0 + $0xe] ss:$16 sm:%s114_s18]   ;;  %s142_s28 = smov 3  ;;  %s145_s29 = smov 12 }
   0xa   :  { %v431_v19 = vld [vmem:[%s865_s0 + $0x6] ss:$16 sm:%s102_s8]   ;;  %75 = vrot.lane.b32.xlu0 %v74_v16, %s501_s23  ;;  %v100_v20 = vsel %vm46_vm1, %v430_v18, %v95_v17  ;;  %s134_s23 = smov 3  ;;  %s502_s30 = smov 96   ;;  %v117_v25 = vsel %vm41_vm0, %v433_v23, %v432_v21 }
   0xb   :  { %v105_v22 = vsel %vm51_vm2, %v431_v19, %v100_v20  ;;  %v434_v24 = vld [vmem:[%s865_s0 + $0xe] ss:$16 sm:%s119_s19]   ;;  %s150_s4 = smov 48  ;;  %s155_s5 = smov 192  ;;  %v439_v29 = vld [vmem:[%s865_s0 + $0x5] ss:$16 sm:%s142_s28]  }
   0xc   :  { %106 = vrot.lane.b32.xlu1 %v105_v22, %s502_s30  ;;  %v435_v26 = vld [vmem:[%s865_s0 + $0xe] ss:$16 sm:%s124_s22]   ;;  %v122_v27 = vsel %vm46_vm1, %v434_v24, %v117_v25  ;;  %s164_s10 = smov 3  ;;  %s167_s15 = smov 12 }
   0xd   :  { %v437_v28 = vld [vmem:[%s865_s0 + $0x86] ss:$8 sm:%s134_s23]   ;;  %v127_v30 = vsel %vm51_vm2, %v435_v26, %v122_v27  ;;  %v440_v31 = vld [vmem:[%s865_s0 + $0x5] ss:$16 sm:%s145_s29]   ;;  %s172_s16 = smov 48  ;;  %s177_s19 = smov 192 }
   0xe   :  { %v441_v32 = vld [vmem:[%s865_s0 + $0x5] ss:$16 sm:%s150_s4]   ;;  %128 = vrot.lane.b32.xlu0 %v127_v30, %s502_s30  ;;  %v148_v33 = vsel %vm41_vm0, %v440_v31, %v439_v29  ;;  %s187_s20 = smov 3  ;;  %s195_s23 = smov 3 }
   0xf   :  { %v442_v34 = vld [vmem:[%s865_s0 + $0x5] ss:$16 sm:%s155_s5]   ;;  %v153_v35 = vsel %vm46_vm1, %v441_v32, %v148_v33  ;;  %v443_v36 = vld [vmem:[%s865_s0 + $0xd] ss:$16 sm:%s164_s10]   ;;  %s198_s28 = smov 12  ;;  %s203_s29 = smov 48 }
  0x10   :  { %136 = vrot.lane.b32.xlu1 %v437_v28, %s502_s30  ;;  %v158_v37 = vsel %vm51_vm2, %v442_v34, %v153_v35  ;;  %v444_v38 = vld [vmem:[%s865_s0 + $0xd] ss:$16 sm:%s167_s15]   ;;  %s208_s5 = smov 192  ;;  %s503_s6 = smov 80  }
  0x11   :  { %v445_v39 = vld [vmem:[%s865_s0 + $0xd] ss:$16 sm:%s172_s16]   ;;  %v170_v40 = vsel %vm41_vm0, %v444_v38, %v443_v36  ;;  %v450_v44 = vld [vmem:[%s865_s0 + $0x4] ss:$16 sm:%s195_s23]   ;;  %s217_s9 = smov 3  ;;  %s220_s10 = smov 12 }
  0x12   :  { %v446_v41 = vld [vmem:[%s865_s0 + $0xd] ss:$16 sm:%s177_s19]   ;;  %159 = vrot.lane.b32.xlu0 %v158_v37, %s503_s6  ;;  %v175_v43 = vsel %vm46_vm1, %v445_v39, %v170_v40  ;;  %s225_s15 = smov 48  ;;  %s230_s18 = smov 192 }
  0x13   :  { %v448_v42 = vld [vmem:[%s865_s0 + $0x85] ss:$8 sm:%s187_s20]   ;;  %v180_v45 = vsel %vm51_vm2, %v446_v41, %v175_v43  ;;  %v451_v46 = vld [vmem:[%s865_s0 + $0x4] ss:$16 sm:%s198_s28]   ;;  %s240_s19 = smov 3  ;;  %s248_s24 = smov 3 }
  0x14   :  { %v452_v47 = vld [vmem:[%s865_s0 + $0x4] ss:$16 sm:%s203_s29]   ;;  %181 = vrot.lane.b32.xlu1 %v180_v45, %s503_s6  ;;  %v201_v48 = vsel %vm41_vm0, %v451_v46, %v450_v44  ;;  %s251_s27 = smov 12  ;;  %s256_s28 = smov 48 }
  0x15   :  { %v453_v49 = vld [vmem:[%s865_s0 + $0x4] ss:$16 sm:%s208_s5]   ;;  %v206_v50 = vsel %vm46_vm1, %v452_v47, %v201_v48  ;;  %v454_v51 = vld [vmem:[%s865_s0 + $0xc] ss:$16 sm:%s217_s9]   ;;  %s261_s4 = smov 192  ;;  %s504_s5 = smov 64  }
  0x16   :  { %v455_v52 = vld [vmem:[%s865_s0 + $0xc] ss:$16 sm:%s220_s10]   ;;  %189 = vrot.lane.b32.xlu0 %v448_v42, %s503_s6  ;;  %v211_v53 = vsel %vm51_vm2, %v453_v49, %v206_v50  ;;  %s270_s8 = smov 3  ;;  %s273_s9 = smov 12 }
  0x17   :  { %v223_v54 = vsel %vm41_vm0, %v455_v52, %v454_v51  ;;  %v456_v55 = vld [vmem:[%s865_s0 + $0xc] ss:$16 sm:%s225_s15]   ;;  %v461_v60 = vld [vmem:[%s865_s0 + $0x3] ss:$16 sm:%s248_s24]   ;;  %s278_s14 = smov 48  ;;  %s283_s17 = smov 192 }
  0x18   :  { %v228_v56 = vsel %vm46_vm1, %v456_v55, %v223_v54  ;;  %v457_v57 = vld [vmem:[%s865_s0 + $0xc] ss:$16 sm:%s230_s18]   ;;  %212 = vrot.lane.b32.xlu1 %v211_v53, %s504_s5  ;;  %s293_s18 = smov 3  ;;  %s301_s23 = smov 3 }
  0x19   :  { %v459_v58 = vld [vmem:[%s865_s0 + $0x84] ss:$8 sm:%s240_s19]   ;;  %v233_v59 = vsel %vm51_vm2, %v457_v57, %v228_v56  ;;  %v462_v61 = vld [vmem:[%s865_s0 + $0x3] ss:$16 sm:%s251_s27]   ;;  %s304_s26 = smov 12  ;;  %s309_s27 = smov 48 }
  0x1a   :  { %v463_v62 = vld [vmem:[%s865_s0 + $0x3] ss:$16 sm:%s256_s28]   ;;  %234 = vrot.lane.b32.xlu0 %v233_v59, %s504_s5  ;;  %v254_v63 = vsel %vm41_vm0, %v462_v61, %v461_v60  ;;  %s314_s3 = smov 192  ;;  %s323_s7 = smov 3 }
  0x1b   :  { %v464_v0 = vld [vmem:[%s865_s0 + $0x3] ss:$16 sm:%s261_s4]   ;;  %v259_v1 = vsel %vm46_vm1, %v463_v62, %v254_v63  ;;  %v465_v2 = vld [vmem:[%s865_s0 + $0xb] ss:$16 sm:%s270_s8]   ;;  %s505_s4 = smov 48   ;;  %s326_s8 = smov 12 }
  0x1c   :  { %v466_v3 = vld [vmem:[%s865_s0 + $0xb] ss:$16 sm:%s273_s9]   ;;  %242 = vrot.lane.b32.xlu1 %v459_v58, %s504_s5  ;;  %v264_v4 = vsel %vm51_vm2, %v464_v0, %v259_v1  ;;  %s331_s13 = smov 48  ;;  %s336_s16 = smov 192 }
  0x1d   :  { %v276_v5 = vsel %vm41_vm0, %v466_v3, %v465_v2  ;;  %v467_v6 = vld [vmem:[%s865_s0 + $0xb] ss:$16 sm:%s278_s14]   ;;  %v472_v11 = vld [vmem:[%s865_s0 + $0x2] ss:$16 sm:%s301_s23]   ;;  %s354_s22 = smov 3  ;;  %s357_s25 = smov 12 }
  0x1e   :  { %v281_v7 = vsel %vm46_vm1, %v467_v6, %v276_v5  ;;  %v468_v8 = vld [vmem:[%s865_s0 + $0xb] ss:$16 sm:%s283_s17]   ;;  %265 = vrot.lane.b32.xlu0 %v264_v4, %s505_s4  ;;  %s346_s17 = smov 3  ;;  %s367_s2 = smov 192 }
  0x1f   :  { %v470_v9 = vld [vmem:[%s865_s0 + $0x83] ss:$8 sm:%s293_s18]   ;;  %v286_v10 = vsel %vm51_vm2, %v468_v8, %v281_v7  ;;  %v473_v12 = vld [vmem:[%s865_s0 + $0x2] ss:$16 sm:%s304_s26]   ;;  %s362_s26 = smov 48  ;;  %s384_s14 = smov 48 }
  0x20   :  { %v474_v13 = vld [vmem:[%s865_s0 + $0x2] ss:$16 sm:%s309_s27]   ;;  %287 = vrot.lane.b32.xlu1 %v286_v10, %s505_s4  ;;  %v307_v14 = vsel %vm41_vm0, %v473_v12, %v472_v11  ;;  %v2_v27 = vld [vmem:[%s865_s0] ss:$8 sm:$0xf]   ;;  %s30_s24 = smov 3 }
  0x21   :  { %v475_v15 = vld [vmem:[%s865_s0 + $0x2] ss:$16 sm:%s314_s3]   ;;  %v312_v16 = vsel %vm46_vm1, %v474_v13, %v307_v14  ;;  %v476_v17 = vld [vmem:[%s865_s0 + $0xa] ss:$16 sm:%s323_s7]   ;;  %s376_s3 = smov 3  ;;  %s379_s7 = smov 12 }
  0x22   :  { %v477_v18 = vld [vmem:[%s865_s0 + $0xa] ss:$16 sm:%s326_s8]   ;;  %295 = vrot.lane.b32.xlu0 %v470_v9, %s505_s4  ;;  %v317_v19 = vsel %vm51_vm2, %v475_v15, %v312_v16  ;;  %s506_s4 = smov 32   ;;  %v3_v32 = vld [vmem:[%s865_s0] ss:$8 sm:$0xf0]  }
  0x23   :  { %v329_v20 = vsel %vm41_vm0, %v477_v18, %v476_v17  ;;  %v478_v21 = vld [vmem:[%s865_s0 + $0xa] ss:$16 sm:%s331_s13]   ;;  %v483_v26 = vld [vmem:[%s865_s0 + $0x1] ss:$16 sm:%s354_s22]   ;;  %v5_v36 = vsel %vm4_vm3, %v3_v32, %v2_v27  ;;  %s399_s27 = smov 3  ;;  %s507_s11 = smov 16  }
  0x24   :  { %v334_v22 = vsel %vm46_vm1, %v478_v21, %v329_v20  ;;  %v479_v23 = vld [vmem:[%s865_s0 + $0xa] ss:$16 sm:%s336_s16]   ;;  %318 = vrot.lane.b32.xlu1 %v317_v19, %s506_s4  ;;  %7 = vst.msk [vmem:[%s866_s1] ss:$8 sm:$0x3] %vm6_vm4, %v5_v36  }
  0x25   :  { %v481_v24 = vld [vmem:[%s865_s0 + $0x82] ss:$8 sm:%s346_s17]   ;;  %v339_v25 = vsel %vm51_vm2, %v479_v23, %v334_v22  ;;  %v484_v28 = vld [vmem:[%s865_s0 + $0x1] ss:$16 sm:%s357_s25]   ;;  %s389_s17 = smov 192 }
  0x26   :  { %v485_v29 = vld [vmem:[%s865_s0 + $0x1] ss:$16 sm:%s362_s26]   ;;  %340 = vrot.lane.b32.xlu0 %v339_v25, %s506_s4  ;;  %v360_v30 = vsel %vm41_vm0, %v484_v28, %v483_v26  ;;  %406 = vst.msk [vmem:[%s866_s1 - $0xf] ss:$8 sm:$0xc] %vm6_vm4, %v5_v36  }
  0x27   :  { %v486_v31 = vld [vmem:[%s865_s0 + $0x1] ss:$16 sm:%s367_s2]   ;;  %v365_v33 = vsel %vm46_vm1, %v485_v29, %v360_v30  ;;  %v487_v34 = vld [vmem:[%s865_s0 + $0x9] ss:$16 sm:%s376_s3]  }
  0x28   :  { %v488_v35 = vld [vmem:[%s865_s0 + $0x9] ss:$16 sm:%s379_s7]   ;;  %348 = vrot.lane.b32.xlu1 %v481_v24, %s506_s4  ;;  %v370_v37 = vsel %vm51_vm2, %v486_v31, %v365_v33  ;;  %407 = vst.msk [vmem:[%s866_s1 - $0x1e] ss:$8 sm:$0x30] %vm6_vm4, %v5_v36  }
  0x29   :  { %v382_v38 = vsel %vm41_vm0, %v488_v35, %v487_v34  ;;  %v489_v39 = vld [vmem:[%s865_s0 + $0x9] ss:$16 sm:%s384_s14]   ;;  %408 = vst.msk [vmem:[%s866_s1 - $0x2d] ss:$8 sm:$0xc0] %vm6_vm4, %v5_v36  }
  0x2a   :  { %v409_v40 = vld [vmem:[%s865_s0 + $0x40] ss:$8 sm:$0xf]   ;;  %v387_v41 = vsel %vm46_vm1, %v489_v39, %v382_v38  ;;  %v490_v42 = vld [vmem:[%s865_s0 + $0x9] ss:$16 sm:%s389_s17]   ;;  %371 = vrot.lane.b32.xlu0 %v370_v37, %s507_s11 }
  0x2b   :  { %v392_v43 = vsel %vm51_vm2, %v490_v42, %v387_v41  ;;  %v415_v44 = vld [vmem:[%s865_s0 + $0x80] ss:$8 sm:%s30_s24]   ;;  %v492_v46 = vld [vmem:[%s865_s0 + $0x81] ss:$8 sm:%s399_s27]  }
  0x2c   :  { %v410_v45 = vld [vmem:[%s865_s0 + $0x40] ss:$8 sm:$0xf0]   ;;  %416 = vst.msk [vmem:[%s866_s1 + $0x10] ss:$8 sm:$0x3] %vm6_vm4, %v415_v44   ;;  %393 = vrot.lane.b32.xlu1 %v392_v43, %s507_s11 }
  0x2d   :  { %v19_v47 = vsel %vm4_vm3, %v410_v45, %v409_v40 }
  0x2e   :  { %411 = vst.msk [vmem:[%s866_s1 + $0x4] ss:$8 sm:$0x3] %vm6_vm4, %v19_v47   ;;  %412 = vst.msk [vmem:[%s866_s1 - $0xb] ss:$8 sm:$0xc] %vm6_vm4, %v19_v47   ;;  %401 = vrot.lane.b32.xlu0 %v492_v46, %s507_s11 }
  0x2f   :  { %413 = vst.msk [vmem:[%s866_s1 - $0x1a] ss:$8 sm:$0x30] %vm6_vm4, %v19_v47   ;;  %414 = vst.msk [vmem:[%s866_s1 - $0x29] ss:$8 sm:$0xc0] %vm6_vm4, %v19_v47  }
  0x78   :  { %v84_v48 = vpop.permute.xlu1 %83   ;;  %v54_v49 = vpop.permute.xlu0 %53  }
  0x79   :  { %427 = vst.msk [vmem:[%s866_s1 + $0x10] ss:$8 sm:$0x3] %vm55_vm5, %v84_v48   ;;  %56 = vst.msk [vmem:[%s866_s1] sm:$0xff] %vm55_vm5, %v54_v49  }
  0x7c   :  { %v76_v50 = vpop.permute.xlu0 %75  }
  0x7d   :  { %425 = vst.msk [vmem:[%s866_s1 + $0x8] sm:$0xff] %vm55_vm5, %v76_v50  }
  0x7e   :  { %v107_v51 = vpop.permute.xlu1 %106  }
  0x7f   :  { %109 = vst.msk [vmem:[%s866_s1] sm:$0xff] %vm108_vm6, %v107_v51  }
  0x80   :  { %v129_v52 = vpop.permute.xlu0 %128  }
  0x81   :  { %436 = vst.msk [vmem:[%s866_s1 + $0x8] sm:$0xff] %vm108_vm6, %v129_v52  }
  0x82   :  { %v137_v53 = vpop.permute.xlu1 %136  }
  0x83   :  { %438 = vst.msk [vmem:[%s866_s1 + $0x10] ss:$8 sm:$0x3] %vm108_vm6, %v137_v53  }
  0x84   :  { %v160_v54 = vpop.permute.xlu0 %159  }
  0x85   :  { %162 = vst.msk [vmem:[%s866_s1] sm:$0xff] %vm161_vm7, %v160_v54  }
  0x86   :  { %v182_v55 = vpop.permute.xlu1 %181  }
  0x87   :  { %447 = vst.msk [vmem:[%s866_s1 + $0x8] sm:$0xff] %vm161_vm7, %v182_v55  }
  0x88   :  { %v190_v56 = vpop.permute.xlu0 %189  }
  0x89   :  { %449 = vst.msk [vmem:[%s866_s1 + $0x10] ss:$8 sm:$0x3] %vm161_vm7, %v190_v56  }
  0x8a   :  { %v213_v57 = vpop.permute.xlu1 %212  }
  0x8b   :  { %215 = vst.msk [vmem:[%s866_s1] sm:$0xff] %vm214_vm8, %v213_v57  }
  0x8c   :  { %v235_v58 = vpop.permute.xlu0 %234  }
  0x8d   :  { %458 = vst.msk [vmem:[%s866_s1 + $0x8] sm:$0xff] %vm214_vm8, %v235_v58  }
  0x8e   :  { %v243_v59 = vpop.permute.xlu1 %242  }
  0x8f   :  { %460 = vst.msk [vmem:[%s866_s1 + $0x10] ss:$8 sm:$0x3] %vm214_vm8, %v243_v59  }
  0x90   :  { %v266_v60 = vpop.permute.xlu0 %265  }
  0x91   :  { %268 = vst.msk [vmem:[%s866_s1] sm:$0xff] %vm267_vm9, %v266_v60  }
  0x92   :  { %v288_v61 = vpop.permute.xlu1 %287  }
  0x93   :  { %469 = vst.msk [vmem:[%s866_s1 + $0x8] sm:$0xff] %vm267_vm9, %v288_v61  }
  0x94   :  { %v296_v62 = vpop.permute.xlu0 %295  }
  0x95   :  { %471 = vst.msk [vmem:[%s866_s1 + $0x10] ss:$8 sm:$0x3] %vm267_vm9, %v296_v62  }
  0x96   :  { %v319_v63 = vpop.permute.xlu1 %318  }
  0x97   :  { %321 = vst.msk [vmem:[%s866_s1] sm:$0xff] %vm320_vm10, %v319_v63  }
  0x98   :  { %v341_v0 = vpop.permute.xlu0 %340  }
  0x99   :  { %480 = vst.msk [vmem:[%s866_s1 + $0x8] sm:$0xff] %vm320_vm10, %v341_v0  }
  0x9a   :  { %v349_v1 = vpop.permute.xlu1 %348  }
  0x9b   :  { %482 = vst.msk [vmem:[%s866_s1 + $0x10] ss:$8 sm:$0x3] %vm320_vm10, %v349_v1  }
  0x9c   :  { %v372_v2 = vpop.permute.xlu0 %371  }
  0x9d   :  { %374 = vst.msk [vmem:[%s866_s1] sm:$0xff] %vm373_vm11, %v372_v2  }
  0x9e   :  { %v394_v3 = vpop.permute.xlu1 %393  }
  0x9f   :  { %491 = vst.msk [vmem:[%s866_s1 + $0x8] sm:$0xff] %vm373_vm11, %v394_v3  }
  0xa0   :  { %v402_v4 = vpop.permute.xlu0 %401  }
  0xa1   :  { %493 = vst.msk [vmem:[%s866_s1 + $0x10] ss:$8 sm:$0x3] %vm373_vm11, %v402_v4  }

</bundles_post_ra>
